<compile_context>
chip_gen: v5e
topology: v5e:2x2
jax: 0.10.0
libtpu: 0.0.40
codegen_flags: <defaults>
</compile_context>

<pallas_src>
import math
from functools import partial

import jax
import jax.numpy as jnp
from jax import lax
from jax.experimental import pallas as pl
from jax.experimental.pallas import tpu as pltpu


def _downsample_conv_kernel(x_ref, halo_ref, w01_ref, w2_ref, b_ref, o_ref, acc_ref,
                            *, flat_out):
    """One (batch, H-tile) grid step of the strided 3x3 conv.

    x_ref   : (1, TH, 2, Wq, 2*Cin)  TH H-pairs of the zero-padded NHWC input,
                                     W pre-split so each W-pair holds 2*Cin channels.
    halo_ref: (1, 1, Wq, 2*Cin)      first even padded row of the *next* tile
                                     (kh=2 tap of this tile's last output row).
    w01_ref : (3, 2*Cin, Cout)       taps (kw=0, kw=1) fused along Cin, per kh.
    w2_ref  : (3, K2, Cout)          tap kw=2; K2 = Cin (lane-aligned) or 2*Cin
                                     (zero-padded) depending on Cin % 128.
    b_ref   : (1, Cout) f32          bias.
    o_ref   : (1, TH, Wout, Cout) or (1, 1, TH, Wout*Cout)  output tile (NHWC).
    acc_ref : VMEM (TH, Wout, Cout) f32 scratch accumulator.
    """
    th = x_ref.shape[1]
    wq = x_ref.shape[3]
    kdim = x_ref.shape[4]            # 2 * Cin
    k2 = w2_ref.shape[1]             # Cin or 2 * Cin
    cout = w01_ref.shape[2]
    wout = wq - 1

    def taps(rows, kh):
        """rows (R, Wq, 2*Cin) -> f32 (R, Wout, Cout): contribution of taps (kh, kw=0..2)."""
        r = rows.shape[0]
        p01 = rows[:, 0:wout, :].reshape(r * wout, kdim)        # cols 2*ow, 2*ow+1
        p2 = rows[:, 1:wout + 1, 0:k2].reshape(r * wout, k2)    # col 2*ow+2
        s = jnp.dot(p01, w01_ref[kh], preferred_element_type=jnp.float32)
        s = s + jnp.dot(p2, w2_ref[kh], preferred_element_type=jnp.float32)
        return s.reshape(r, wout, cout)

    # kh=0 (even padded rows) + kh=1 (odd rows): chained dots, single accumulator write.
    acc_ref[...] = taps(x_ref[0, :, 0, :, :], 0) + taps(x_ref[0, :, 1, :, :], 1)

    # kh=2: the even row of the *next* H-pair feeds output row h.  Two matmuls into
    # disjoint accumulator row ranges -- no (TH, Wq, 2*Cin) concatenate materialized.
    if th > 1:
        acc_ref[0:th - 1] += taps(x_ref[0, 1:th, 0, :, :], 2)
    acc_ref[th - 1:th] += taps(halo_ref[0], 2)

    # Bias folded into the single output store (accumulator read exactly once).
    out = acc_ref[...] + b_ref[...]
    if flat_out:                     # (1, 1, TH, Wout*Cout): lane-dense store, small Cout
        o_ref[0, 0] = out.reshape(th, wout * cout).astype(o_ref.dtype)
    else:                            # (1, TH, Wout, Cout): Cout >= 128 already lane-dense
        o_ref[0] = out.astype(o_ref.dtype)


def _vmem_limit_bytes():
    """Generation-aware scoped-VMEM limit: ~48 MiB on v7x (64 MiB physical),
    ~100 MiB on v5e/v6e (128 MiB physical).  Conservative fallback if query fails."""
    try:
        cap = pltpu.get_tpu_info().vmem_capacity_bytes
    except Exception:
        cap = 64 * 1024 * 1024
    if cap > 96 * 1024 * 1024:
        return 100 * 1024 * 1024
    return 48 * 1024 * 1024


def _choose_tile_h(batch, hout, wout, wq, cin, itemsize, vmem_limit, weight_bytes):
    """Largest TH | Hout s.t. (a) double-buffered in/out blocks + f32 accumulator fit
    comfortably under the VMEM limit, (b) M = TH*Wout <= 2048 rows, and (c) the grid
    keeps >= ~4 steps so both v7x TensorCores get work."""
    in_row = 2 * wq * 2 * cin * itemsize          # one H-pair of x_split
    acc_row = wout * cin * 4                      # f32 accumulator
    out_row = wout * cin * itemsize
    per_row = 2 * in_row + acc_row + 2 * out_row  # 2x: double-buffered in/out blocks
    budget = int(vmem_limit * 0.7) - 2 * weight_bytes
    cap = max(1, min(max(1, budget) // per_row, 2048 // max(1, wout)))
    min_tiles = -(-4 // batch)                    # ceil(4 / batch)
    if hout >= min_tiles:
        cap = min(cap, max(1, hout // min_tiles))
    th = 1
    for d in range(1, hout + 1):
        if hout % d == 0 and d <= cap:
            th = d
    return th


@partial(jax.jit, static_argnames=("out_layout",))
def downsample_pallas(x_nchw, w_oihw, bias, temb=None, *, out_layout="NCHW"):
    """Equivalent of DownSample.forward(x, temb): conv3x3 / stride 2 / pad 1."""
    del temb                                       # unused by the PyTorch module too
    B, C, H, W = x_nchw.shape
    assert H % 2 == 0 and W % 2 == 0, "kernel assumes even spatial dims"
    # TODO(synk): odd H/W (PyTorch supports them) would need ragged output tiles.
    Hout, Wout = H // 2, W // 2
    Hp, Wp = H + 2, W + 2
    Wq = Wp // 2
    dtype = x_nchw.dtype
    itemsize = jnp.dtype(dtype).itemsize

    pad_w2 = (C % 128) != 0          # Cin prefix slice would be lane-partial -> pad kw=2
    flat_out = C < 128               # lane-dense output store for small channel counts
    k2dim = 2 * C if pad_w2 else C

    weight_bytes = (3 * 2 * C * C + 3 * k2dim * C) * itemsize + C * 4
    vmem_limit = _vmem_limit_bytes()
    TH = _choose_tile_h(B, Hout, Wout, Wq, C, itemsize, vmem_limit, weight_bytes)
    nT = Hout // TH

    # --- layout glue (transpose+pad fuse into one XLA pass; the reshapes are free) ---
    x_nhwc = jnp.transpose(x_nchw, (0, 2, 3, 1))
    xp = jnp.pad(x_nhwc, ((0, 0), (1, 1), (1, 1), (0, 0)))
    x_split = xp.reshape(B, Hp // 2, 2, Wq, 2 * C)
    # kh=2 halo: padded row 2*TH*(t+1) for each H-tile t (tiny: nT rows per batch).
    halo = xp[:, 2 * TH: 2 * TH * nT + 1: 2 * TH, :, :].reshape(B, nT, Wq, 2 * C)

    # Weights: (kw=0, kw=1) fused along Cin; kw=2 unpadded when Cin % 128 == 0
    # (lane-aligned prefix slice in-kernel), zero-padded to 2*Cin otherwise.
    w_hwio = jnp.transpose(w_oihw, (2, 3, 1, 0)).astype(dtype)     # (3, 3, Cin, Cout)
    w01 = w_hwio[:, 0:2].reshape(3, 2 * C, C)
    if pad_w2:
        w2 = jnp.concatenate([w_hwio[:, 2], jnp.zeros((3, C, C), dtype)], axis=1)
    else:
        w2 = w_hwio[:, 2]
    b2d = bias.reshape(1, C).astype(jnp.float32)

    macs_per_out = 3 * (2 * C + k2dim)             # 9*C (unpadded) or 12*C (padded kw=2)
    flops = 2 * B * Hout * Wout * C * macs_per_out
    bytes_accessed = ((x_split.size + halo.size + w01.size + w2.size) * itemsize
                      + b2d.size * 4 + B * Hout * Wout * C * itemsize)

    if flat_out:
        out_shape = jax.ShapeDtypeStruct((B, nT, TH, Wout * C), dtype)
        out_spec = pl.BlockSpec((1, 1, TH, Wout * C), lambda b, t: (b, t, 0, 0))
    else:
        out_shape = jax.ShapeDtypeStruct((B, Hout, Wout, C), dtype)
        out_spec = pl.BlockSpec((1, TH, Wout, C), lambda b, t: (b, t, 0, 0))

    out = pl.pallas_call(
        partial(_downsample_conv_kernel, flat_out=flat_out),
        out_shape=out_shape,
        grid_spec=pltpu.PrefetchScalarGridSpec(
            num_scalar_prefetch=0,
            grid=(B, nT),
            in_specs=[
                pl.BlockSpec((1, TH, 2, Wq, 2 * C), lambda b, t: (b, t, 0, 0, 0)),
                pl.BlockSpec((1, 1, Wq, 2 * C), lambda b, t: (b, t, 0, 0)),
                pl.BlockSpec((3, 2 * C, C), lambda b, t: (0, 0, 0)),
                pl.BlockSpec((3, k2dim, C), lambda b, t: (0, 0, 0)),
                pl.BlockSpec((1, C), lambda b, t: (0, 0)),
            ],
            out_specs=out_spec,
            scratch_shapes=[pltpu.VMEM((TH, Wout, C), jnp.float32)],
        ),
        compiler_params=pltpu.CompilerParams(
            dimension_semantics=("parallel", "parallel"),
            vmem_limit_bytes=vmem_limit,
            allow_input_fusion=[True, True, True, True, True],
        ),
        cost_estimate=pl.CostEstimate(
            flops=int(flops), transcendentals=0, bytes_accessed=int(bytes_accessed)),
    )(x_split, halo, w01, w2, b2d)

    out_nhwc = out.reshape(B, Hout, Wout, C) if flat_out else out
    if out_layout == "NHWC":        # consumers that accept NHWC skip an HBM pass
        return out_nhwc
    return jnp.transpose(out_nhwc, (0, 3, 1, 2))       # back to NCHW (module semantics)


if __name__ == "__main__":
    key = jax.random.PRNGKey(0)

    def ref_conv(x, w, b):
        return lax.conv_general_dilated(
            x, w, window_strides=(2, 2), padding=((1, 1), (1, 1)),
            dimension_numbers=("NCHW", "OIHW", "NCHW"),
        ) + b[None, :, None, None]

    def make_case(k, B, C, H, W):
        kx, kw_, kb, kt = jax.random.split(k, 4)
        x = jax.random.normal(kx, (B, C, H, W), jnp.float32)
        temb = jax.random.normal(kt, (B, 4 * C), jnp.float32)      # unused, like PyTorch
        fan = C * 3 * 3                                            # xavier_uniform_ bound
        bound = math.sqrt(6.0 / (fan + fan))
        w_oihw = jax.random.uniform(kw_, (C, C, 3, 3), jnp.float32, -bound, bound)
        b = 0.1 * jax.random.normal(kb, (C,), jnp.float32)         # nonzero: exercises bias
        return x, w_oihw, b, temb

    key1, key2 = jax.random.split(key)

    # Case 1: small channels (padded kw=2 tap + lane-dense flattened output path).
    x, w, b, temb = make_case(key1, 2, 4, 16, 16)
    out = jax.block_until_ready(downsample_pallas(x, w, b, temb))
    ref = ref_conv(x, w, b)
    assert out.shape == (2, 4, 8, 8)
    assert jnp.allclose(out, ref, atol=2e-3, rtol=2e-3), "mismatch vs reference conv (C=4)"

    # Case 2: lane-aligned channels (unpadded kw=2 tap + natural NHWC-tiled output path).
    x, w, b, temb = make_case(key2, 1, 128, 8, 8)
    out = jax.block_until_ready(downsample_pallas(x, w, b, temb))
    ref = ref_conv(x, w, b)
    assert out.shape == (1, 128, 4, 4)
    assert jnp.allclose(out, ref, atol=3e-2, rtol=3e-2), "mismatch vs reference conv (C=128)"

    print("KERNEL_OK")
</pallas_src>

<mosaic_0001>
module attributes {stable_mosaic.version = 11 : i64} {
  func.func @_downsample_conv_kernel(%arg0: i32, %arg1: i32, %arg2: memref<1x4x2x9x8xf32, #tpu.memory_space<vmem>>, %arg3: memref<1x1x9x8xf32, #tpu.memory_space<vmem>>, %arg4: memref<3x8x4xf32, #tpu.memory_space<vmem>>, %arg5: memref<3x8x4xf32, #tpu.memory_space<vmem>>, %arg6: memref<1x4xf32, #tpu.memory_space<vmem>>, %arg7: memref<1x1x4x32xf32, #tpu.memory_space<vmem>>, %arg8: memref<4x8x4xf32, #tpu.memory_space<vmem>>) attributes {dimension_semantics = [#tpu.dimension_semantics<parallel>, #tpu.dimension_semantics<parallel>], iteration_bounds = array<i64: 2, 2>, scalar_prefetch = 0 : i64, scratch_operands = 1 : i64, tpu.core_type = #tpu.core_type<tc>, window_params = [{transform_indices = @transform_0, window_bounds = array<i64: 1, 4, 2, 9, 8>}, {transform_indices = @transform_1, window_bounds = array<i64: 1, 1, 9, 8>}, {pipeline_mode = #tpu.pipeline_mode<synchronous>, transform_indices = @transform_2, window_bounds = array<i64: 3, 8, 4>}, {pipeline_mode = #tpu.pipeline_mode<synchronous>, transform_indices = @transform_3, window_bounds = array<i64: 3, 8, 4>}, {pipeline_mode = #tpu.pipeline_mode<synchronous>, transform_indices = @transform_4, window_bounds = array<i64: 1, 4>}, {transform_indices = @transform_5, window_bounds = array<i64: 1, 1, 4, 32>}]} {
    %c0 = arith.constant 0 : index
    %c0_0 = arith.constant 0 : index
    %c0_1 = arith.constant 0 : index
    %c0_2 = arith.constant 0 : index
    %c0_3 = arith.constant 0 : index
    %0 = vector.load %arg2[%c0, %c0_0, %c0_1, %c0_2, %c0_3] : memref<1x4x2x9x8xf32, #tpu.memory_space<vmem>>, vector<1x4x1x9x8xf32>
    %1 = vector.shape_cast %0 : vector<1x4x1x9x8xf32> to vector<4x9x8xf32>
    %2 = vector.extract_strided_slice %1 {offsets = [0, 0, 0], sizes = [4, 8, 8], strides = [1, 1, 1]} : vector<4x9x8xf32> to vector<4x8x8xf32>
    %3 = vector.shape_cast %2 : vector<4x8x8xf32> to vector<32x8xf32>
    %4 = vector.extract_strided_slice %1 {offsets = [0, 1, 0], sizes = [4, 8, 8], strides = [1, 1, 1]} : vector<4x9x8xf32> to vector<4x8x8xf32>
    %5 = vector.shape_cast %4 : vector<4x8x8xf32> to vector<32x8xf32>
    %c0_4 = arith.constant 0 : index
    %c0_5 = arith.constant 0 : index
    %c0_6 = arith.constant 0 : index
    %6 = vector.load %arg4[%c0_4, %c0_5, %c0_6] : memref<3x8x4xf32, #tpu.memory_space<vmem>>, vector<1x8x4xf32>
    %7 = vector.shape_cast %6 : vector<1x8x4xf32> to vector<8x4xf32>
    %cst = arith.constant dense<0.000000e+00> : vector<32x4xf32>
    %8 = tpu.matmul %3, %7, %cst {dimension_numbers = #tpu.dot_dimension_numbers<[1], [0], [0], [1], [0, 0, 1, 1], [], []>} : vector<32x8xf32>, vector<8x4xf32>, vector<32x4xf32> -> vector<32x4xf32>
    %c0_7 = arith.constant 0 : index
    %c0_8 = arith.constant 0 : index
    %c0_9 = arith.constant 0 : index
    %9 = vector.load %arg5[%c0_7, %c0_8, %c0_9] : memref<3x8x4xf32, #tpu.memory_space<vmem>>, vector<1x8x4xf32>
    %10 = vector.shape_cast %9 : vector<1x8x4xf32> to vector<8x4xf32>
    %cst_10 = arith.constant dense<0.000000e+00> : vector<32x4xf32>
    %11 = tpu.matmul %5, %10, %cst_10 {dimension_numbers = #tpu.dot_dimension_numbers<[1], [0], [0], [1], [0, 0, 1, 1], [], []>} : vector<32x8xf32>, vector<8x4xf32>, vector<32x4xf32> -> vector<32x4xf32>
    %12 = arith.addf %8, %11 : vector<32x4xf32>
    %13 = vector.shape_cast %12 : vector<32x4xf32> to vector<4x8x4xf32>
    %c0_11 = arith.constant 0 : index
    %c0_12 = arith.constant 0 : index
    %c1 = arith.constant 1 : index
    %c0_13 = arith.constant 0 : index
    %c0_14 = arith.constant 0 : index
    %14 = vector.load %arg2[%c0_11, %c0_12, %c1, %c0_13, %c0_14] : memref<1x4x2x9x8xf32, #tpu.memory_space<vmem>>, vector<1x4x1x9x8xf32>
    %15 = vector.shape_cast %14 : vector<1x4x1x9x8xf32> to vector<4x9x8xf32>
    %16 = vector.extract_strided_slice %15 {offsets = [0, 0, 0], sizes = [4, 8, 8], strides = [1, 1, 1]} : vector<4x9x8xf32> to vector<4x8x8xf32>
    %17 = vector.shape_cast %16 : vector<4x8x8xf32> to vector<32x8xf32>
    %18 = vector.extract_strided_slice %15 {offsets = [0, 1, 0], sizes = [4, 8, 8], strides = [1, 1, 1]} : vector<4x9x8xf32> to vector<4x8x8xf32>
    %19 = vector.shape_cast %18 : vector<4x8x8xf32> to vector<32x8xf32>
    %c1_15 = arith.constant 1 : index
    %c0_16 = arith.constant 0 : index
    %c0_17 = arith.constant 0 : index
    %20 = vector.load %arg4[%c1_15, %c0_16, %c0_17] : memref<3x8x4xf32, #tpu.memory_space<vmem>>, vector<1x8x4xf32>
    %21 = vector.shape_cast %20 : vector<1x8x4xf32> to vector<8x4xf32>
    %cst_18 = arith.constant dense<0.000000e+00> : vector<32x4xf32>
    %22 = tpu.matmul %17, %21, %cst_18 {dimension_numbers = #tpu.dot_dimension_numbers<[1], [0], [0], [1], [0, 0, 1, 1], [], []>} : vector<32x8xf32>, vector<8x4xf32>, vector<32x4xf32> -> vector<32x4xf32>
    %c1_19 = arith.constant 1 : index
    %c0_20 = arith.constant 0 : index
    %c0_21 = arith.constant 0 : index
    %23 = vector.load %arg5[%c1_19, %c0_20, %c0_21] : memref<3x8x4xf32, #tpu.memory_space<vmem>>, vector<1x8x4xf32>
    %24 = vector.shape_cast %23 : vector<1x8x4xf32> to vector<8x4xf32>
    %cst_22 = arith.constant dense<0.000000e+00> : vector<32x4xf32>
    %25 = tpu.matmul %19, %24, %cst_22 {dimension_numbers = #tpu.dot_dimension_numbers<[1], [0], [0], [1], [0, 0, 1, 1], [], []>} : vector<32x8xf32>, vector<8x4xf32>, vector<32x4xf32> -> vector<32x4xf32>
    %26 = arith.addf %22, %25 : vector<32x4xf32>
    %27 = vector.shape_cast %26 : vector<32x4xf32> to vector<4x8x4xf32>
    %28 = arith.addf %13, %27 : vector<4x8x4xf32>
    %c0_23 = arith.constant 0 : index
    %c0_24 = arith.constant 0 : index
    %c0_25 = arith.constant 0 : index
    %29 = vector.load %arg8[%c0_23, %c0_24, %c0_25] : memref<4x8x4xf32, #tpu.memory_space<vmem>>, vector<4x8x4xf32>
    tpu.vector_store %arg8[%c0_23, %c0_24, %c0_25], %28 {strides = array<i32>} : memref<4x8x4xf32, #tpu.memory_space<vmem>>, vector<4x8x4xf32>,
    %c0_26 = arith.constant 0 : index
    %c0_27 = arith.constant 0 : index
    %c0_28 = arith.constant 0 : index
    %30 = vector.load %arg8[%c0_26, %c0_27, %c0_28] : memref<4x8x4xf32, #tpu.memory_space<vmem>>, vector<3x8x4xf32>
    %c0_29 = arith.constant 0 : index
    %c1_30 = arith.constant 1 : index
    %c0_31 = arith.constant 0 : index
    %c0_32 = arith.constant 0 : index
    %c0_33 = arith.constant 0 : index
    %31 = vector.load %arg2[%c0_29, %c1_30, %c0_31, %c0_32, %c0_33] : memref<1x4x2x9x8xf32, #tpu.memory_space<vmem>>, vector<1x3x1x9x8xf32>
    %32 = vector.shape_cast %31 : vector<1x3x1x9x8xf32> to vector<3x9x8xf32>
    %33 = vector.extract_strided_slice %32 {offsets = [0, 0, 0], sizes = [3, 8, 8], strides = [1, 1, 1]} : vector<3x9x8xf32> to vector<3x8x8xf32>
    %34 = vector.shape_cast %33 : vector<3x8x8xf32> to vector<24x8xf32>
    %35 = vector.extract_strided_slice %32 {offsets = [0, 1, 0], sizes = [3, 8, 8], strides = [1, 1, 1]} : vector<3x9x8xf32> to vector<3x8x8xf32>
    %36 = vector.shape_cast %35 : vector<3x8x8xf32> to vector<24x8xf32>
    %c2 = arith.constant 2 : index
    %c0_34 = arith.constant 0 : index
    %c0_35 = arith.constant 0 : index
    %37 = vector.load %arg4[%c2, %c0_34, %c0_35] : memref<3x8x4xf32, #tpu.memory_space<vmem>>, vector<1x8x4xf32>
    %38 = vector.shape_cast %37 : vector<1x8x4xf32> to vector<8x4xf32>
    %cst_36 = arith.constant dense<0.000000e+00> : vector<24x4xf32>
    %39 = tpu.matmul %34, %38, %cst_36 {dimension_numbers = #tpu.dot_dimension_numbers<[1], [0], [0], [1], [0, 0, 1, 1], [], []>} : vector<24x8xf32>, vector<8x4xf32>, vector<24x4xf32> -> vector<24x4xf32>
    %c2_37 = arith.constant 2 : index
    %c0_38 = arith.constant 0 : index
    %c0_39 = arith.constant 0 : index
    %40 = vector.load %arg5[%c2_37, %c0_38, %c0_39] : memref<3x8x4xf32, #tpu.memory_space<vmem>>, vector<1x8x4xf32>
    %41 = vector.shape_cast %40 : vector<1x8x4xf32> to vector<8x4xf32>
    %cst_40 = arith.constant dense<0.000000e+00> : vector<24x4xf32>
    %42 = tpu.matmul %36, %41, %cst_40 {dimension_numbers = #tpu.dot_dimension_numbers<[1], [0], [0], [1], [0, 0, 1, 1], [], []>} : vector<24x8xf32>, vector<8x4xf32>, vector<24x4xf32> -> vector<24x4xf32>
    %43 = arith.addf %39, %42 : vector<24x4xf32>
    %44 = vector.shape_cast %43 : vector<24x4xf32> to vector<3x8x4xf32>
    %45 = arith.addf %30, %44 : vector<3x8x4xf32>
    %c0_41 = arith.constant 0 : index
    %c0_42 = arith.constant 0 : index
    %c0_43 = arith.constant 0 : index
    %46 = vector.load %arg8[%c0_41, %c0_42, %c0_43] : memref<4x8x4xf32, #tpu.memory_space<vmem>>, vector<3x8x4xf32>
    tpu.vector_store %arg8[%c0_41, %c0_42, %c0_43], %45 {strides = array<i32>} : memref<4x8x4xf32, #tpu.memory_space<vmem>>, vector<3x8x4xf32>,
    %c3 = arith.constant 3 : index
    %c0_44 = arith.constant 0 : index
    %c0_45 = arith.constant 0 : index
    %47 = vector.load %arg8[%c3, %c0_44, %c0_45] : memref<4x8x4xf32, #tpu.memory_space<vmem>>, vector<1x8x4xf32>
    %c0_46 = arith.constant 0 : index
    %c0_47 = arith.constant 0 : index
    %c0_48 = arith.constant 0 : index
    %c0_49 = arith.constant 0 : index
    %48 = vector.load %arg3[%c0_46, %c0_47, %c0_48, %c0_49] : memref<1x1x9x8xf32, #tpu.memory_space<vmem>>, vector<1x1x9x8xf32>
    %49 = vector.shape_cast %48 : vector<1x1x9x8xf32> to vector<1x9x8xf32>
    %50 = vector.extract_strided_slice %49 {offsets = [0, 0, 0], sizes = [1, 8, 8], strides = [1, 1, 1]} : vector<1x9x8xf32> to vector<1x8x8xf32>
    %51 = vector.shape_cast %50 : vector<1x8x8xf32> to vector<8x8xf32>
    %52 = vector.extract_strided_slice %49 {offsets = [0, 1, 0], sizes = [1, 8, 8], strides = [1, 1, 1]} : vector<1x9x8xf32> to vector<1x8x8xf32>
    %53 = vector.shape_cast %52 : vector<1x8x8xf32> to vector<8x8xf32>
    %c2_50 = arith.constant 2 : index
    %c0_51 = arith.constant 0 : index
    %c0_52 = arith.constant 0 : index
    %54 = vector.load %arg4[%c2_50, %c0_51, %c0_52] : memref<3x8x4xf32, #tpu.memory_space<vmem>>, vector<1x8x4xf32>
    %55 = vector.shape_cast %54 : vector<1x8x4xf32> to vector<8x4xf32>
    %cst_53 = arith.constant dense<0.000000e+00> : vector<8x4xf32>
    %56 = tpu.matmul %51, %55, %cst_53 {dimension_numbers = #tpu.dot_dimension_numbers<[1], [0], [0], [1], [0, 0, 1, 1], [], []>} : vector<8x8xf32>, vector<8x4xf32>, vector<8x4xf32> -> vector<8x4xf32>
    %c2_54 = arith.constant 2 : index
    %c0_55 = arith.constant 0 : index
    %c0_56 = arith.constant 0 : index
    %57 = vector.load %arg5[%c2_54, %c0_55, %c0_56] : memref<3x8x4xf32, #tpu.memory_space<vmem>>, vector<1x8x4xf32>
    %58 = vector.shape_cast %57 : vector<1x8x4xf32> to vector<8x4xf32>
    %cst_57 = arith.constant dense<0.000000e+00> : vector<8x4xf32>
    %59 = tpu.matmul %53, %58, %cst_57 {dimension_numbers = #tpu.dot_dimension_numbers<[1], [0], [0], [1], [0, 0, 1, 1], [], []>} : vector<8x8xf32>, vector<8x4xf32>, vector<8x4xf32> -> vector<8x4xf32>
    %60 = arith.addf %56, %59 : vector<8x4xf32>
    %61 = vector.shape_cast %60 : vector<8x4xf32> to vector<1x8x4xf32>
    %62 = arith.addf %47, %61 : vector<1x8x4xf32>
    %c3_58 = arith.constant 3 : index
    %c0_59 = arith.constant 0 : index
    %c0_60 = arith.constant 0 : index
    %63 = vector.load %arg8[%c3_58, %c0_59, %c0_60] : memref<4x8x4xf32, #tpu.memory_space<vmem>>, vector<1x8x4xf32>
    tpu.vector_store %arg8[%c3_58, %c0_59, %c0_60], %62 {strides = array<i32>} : memref<4x8x4xf32, #tpu.memory_space<vmem>>, vector<1x8x4xf32>,
    %c0_61 = arith.constant 0 : index
    %c0_62 = arith.constant 0 : index
    %c0_63 = arith.constant 0 : index
    %64 = vector.load %arg8[%c0_61, %c0_62, %c0_63] : memref<4x8x4xf32, #tpu.memory_space<vmem>>, vector<4x8x4xf32>
    %c0_64 = arith.constant 0 : index
    %c0_65 = arith.constant 0 : index
    %65 = vector.load %arg6[%c0_64, %c0_65] : memref<1x4xf32, #tpu.memory_space<vmem>>, vector<1x4xf32>
    %66 = vector.shape_cast %65 : vector<1x4xf32> to vector<1x1x4xf32>
    %67 = vector.broadcast %66 : vector<1x1x4xf32> to vector<4x8x4xf32>
    %68 = arith.addf %64, %67 : vector<4x8x4xf32>
    %69 = vector.shape_cast %68 : vector<4x8x4xf32> to vector<4x32xf32>
    %c0_66 = arith.constant 0 : index
    %c0_67 = arith.constant 0 : index
    %c0_68 = arith.constant 0 : index
    %c0_69 = arith.constant 0 : index
    %70 = vector.load %arg7[%c0_66, %c0_67, %c0_68, %c0_69] : memref<1x1x4x32xf32, #tpu.memory_space<vmem>>, vector<1x1x4x32xf32>
    %71 = vector.shape_cast %70 : vector<1x1x4x32xf32> to vector<4x32xf32>
    %72 = vector.shape_cast %69 : vector<4x32xf32> to vector<1x1x4x32xf32>
    tpu.vector_store %arg7[%c0_66, %c0_67, %c0_68, %c0_69], %72 {strides = array<i32>} : memref<1x1x4x32xf32, #tpu.memory_space<vmem>>, vector<1x1x4x32xf32>,
    return
  }
  func.func @transform_0(%arg0: i32, %arg1: i32) -> (i32, i32, i32, i32, i32) {
    %c0_i32 = arith.constant 0 : i32
    %c0_i32_0 = arith.constant 0 : i32
    %c0_i32_1 = arith.constant 0 : i32
    %c0_i32_2 = arith.constant 0 : i32
    return %arg0, %arg1, %c0_i32, %c0_i32_0, %c0_i32_1 : i32, i32, i32, i32, i32
  }
  func.func @transform_1(%arg0: i32, %arg1: i32) -> (i32, i32, i32, i32) {
    %c0_i32 = arith.constant 0 : i32
    %c0_i32_0 = arith.constant 0 : i32
    %c0_i32_1 = arith.constant 0 : i32
    return %arg0, %arg1, %c0_i32, %c0_i32_0 : i32, i32, i32, i32
  }
  func.func @transform_2(%arg0: i32, %arg1: i32) -> (i32, i32, i32) {
    %c0_i32 = arith.constant 0 : i32
    %c0_i32_0 = arith.constant 0 : i32
    %c0_i32_1 = arith.constant 0 : i32
    %c0_i32_2 = arith.constant 0 : i32
    return %c0_i32, %c0_i32_0, %c0_i32_1 : i32, i32, i32
  }
  func.func @transform_3(%arg0: i32, %arg1: i32) -> (i32, i32, i32) {
    %c0_i32 = arith.constant 0 : i32
    %c0_i32_0 = arith.constant 0 : i32
    %c0_i32_1 = arith.constant 0 : i32
    %c0_i32_2 = arith.constant 0 : i32
    return %c0_i32, %c0_i32_0, %c0_i32_1 : i32, i32, i32
  }
  func.func @transform_4(%arg0: i32, %arg1: i32) -> (i32, i32) {
    %c0_i32 = arith.constant 0 : i32
    %c0_i32_0 = arith.constant 0 : i32
    %c0_i32_1 = arith.constant 0 : i32
    return %c0_i32, %c0_i32_0 : i32, i32
  }
  func.func @transform_5(%arg0: i32, %arg1: i32) -> (i32, i32, i32, i32) {
    %c0_i32 = arith.constant 0 : i32
    %c0_i32_0 = arith.constant 0 : i32
    %c0_i32_1 = arith.constant 0 : i32
    return %arg0, %arg1, %c0_i32, %c0_i32_0 : i32, i32, i32, i32
  }
}

</mosaic_0001>

<bundles_post_ra>
// kernel: downsample_pallas.2
= control target key start
LH: loop header
LB: loop body
LE: loop exit
PB: predicated region body
PF: predicated region fallthrough
CT: control target
= control target key end

     0   :  { %s1179_s23 = smov 0   ;;  %s1181_s24 = smov 0   ;;  %s1362_s0 = inlined_call_operand.vmem [shape: f32[2,9,2,9,8], index: 0, kind: input, shape index: {}]   ;;  %s1363_s1 = inlined_call_operand.vmem [shape: f32[2,2,9,8], index: 1, kind: input, shape index: {}]   ;;  %s1364_s2 = inlined_call_operand.vmem [shape: f32[3,8,4], index: 2, kind: input, shape index: {}]   ;;  %s1365_s3 = inlined_call_operand.vmem [shape: f32[3,4,4], index: 3, kind: input, shape index: {}]   ;;  %s1366_s4 = inlined_call_operand.<no memory space> [shape: f32[], index: 4, kind: input, shape index: {}]   ;;  %s1367_s5 = inlined_call_operand.vmem [shape: f32[4], index: 5, kind: input, shape index: {}]   ;;  %s1368_s6 = inlined_call_operand.vmem [shape: f32[2,2,4,32], index: 6, kind: output, shape index: {}]  }
   0x1   :  { %v1177_v0 = vstv %s1366_s4  ;;  %s1183_s25 = smov 0   ;;  %s1185_s26 = smov 0  }
   0x2   :  { %s1187_s27 = smov 0  }
   0x3 LB: > { %s26_s4 = sadd.s32 1, %s1120_s25  ;;  %s29_s28 = sadd.s32 1, %s1124_s26  ;;  %s1128_s27 = sphi %s1187_s27, %s17_s27   ;;  %s1124_s26 = sphi %s1185_s26, %s1372_s26   ;;  %s1120_s25 = sphi %s1183_s25, %s1371_s25   ;;  %s1116_s24 = sphi %s1181_s24, %s1370_s24   ;;  %s1112_s23 = sphi %s1179_s23, %s1369_s23  }
   0x4   : > { %p27_p0 = scmp.ge.s32.totalorder %s26_s4, 2  ;;  %p983_p1 = scmp.ge.s32.totalorder %s1128_s27, 1 }
   0x5   : > { %p239_p2 = scmp.lt.s32.totalorder %s1128_s27, 5 }
   0x6   : > { %s1374_s4 = smov (%p27_p0, %s26_s4), 0  ;;  %s1376_s28 = smov (!%p27_p0, %s29_s28), %s1124_s26 }
   0x7   : > { %p240_p3 = pnand %p983_p1, %p239_p2  ;;  %p31_p4 = scmp.ge.s32.totalorder %s1376_s28, 2 }
   0x9   : > { %s1378_s28 = smov (%p31_p4, %s1376_s28), 0  ;;  %243 = sbr.rel (%p240_p3) target bundleno = 356 (0x164), region = 40 }
   0xe   : > { %v330_v1 = vld [vmem:[%s1365_s3] sm:$0xf]  ;;  %v331_v2 = vlaneseq  ;;  %s984_s9 = sshll.u32 %s1112_s23, 2  ;;  %p297_p5 = scmp.lt.s32.totalorder %s1116_s24, 1  ;;  %v992_v4 = vld [vmem:[%s1365_s3 + $0x4] sm:$0xf] }
   0xf   : > { %v409_v3 = vld [vmem:[%s1364_s2] sm:$0xff]  ;;  %p299_p6 = scmp.lt.s32.totalorder %s984_s9, 8  ;;  %v1010_v5 = vld [vmem:[%s1364_s2 + $0x8] sm:$0xff]  ;;  %v1025_v6 = vld [vmem:[%s1364_s2 + $0x10] sm:$0xff]  ;;  %vm411_vm2 = vcmask 64512   ;;  %vm396_vm3 = vcmask 1046528  }
  0x10   : > { %472 = vmatpush.msra.mxu1 %v409_v3  ;;  %1038 = vmatpush.msra.mxu3 %v409_v3  ;;  %v332_v7 = vshrl.u32 %v331_v2, 7  ;;  %v337_v8 = vand.u32 127, %v331_v2  ;;  %s1380_s24 = smov (!%p297_p5, %s1116_s24), 1  ;;  %v993_v9 = vld [vmem:[%s1365_s3 + $0x8] sm:$0xf]  ;;  %p315_p7 = scmp.lt.s32.totalorder %s1112_s23, 1 }
  0x11   : > { %s1382_s9 = smov (!%p299_p6, %s984_s9), 8  ;;  %s1039_s18 = smul.u32 36, %s1380_s24  ;;  %vm597_vm4 = vcmask 31744   ;;  %vm771_vm5 = vcmask 1047556   ;;  %vm857_vm6 = vcmask 97280   ;;  %vm859_vm7 = vcmask 130048  }
  0x12   : > { %579 = vmatpush.msrb.mxu3 %v1010_v5  ;;  %684 = vmatpush.msrb.mxu1 %v1025_v6  ;;  %vm334_vm0 = vcmp.lt.s32.totalorder %v332_v7, 4  ;;  %vm339_vm1 = vcmp.lt.s32.totalorder %v337_v8, 4  ;;  %s985_s19 = sshll.u32 %s1382_s9, 2  ;;  %s1384_s23 = smov (!%p315_p7, %s1112_s23), 1  ;;  %v376_v7 = vld [vmem:[%s1367_s5] sm:$0x1] }
  0x13   : > { %v335_v10 = vsel %vm334_vm0, %v330_v1, %v1177_v0  ;;  %v350_v11 = vsel %vm334_vm0, %v992_v4, %v1177_v0  ;;  %v366_v12 = vsel %vm334_vm0, %v993_v9, %v1177_v0  ;;  %s303_s20 = sadd.s32 %s1039_s18, %s985_s19  ;;  %s987_s7 = sshll.u32 %s1384_s23, 1  ;;  %379 = vst [vmem:[#allocation9] sm:$0x1] %v376_v7  ;;  %vm861_vm8 = vcmask 162816  }
  0x14   : > { %v340_v13 = vsel %vm339_vm1, %v335_v10, %v1177_v0  ;;  %v355_v14 = vsel %vm339_vm1, %v350_v11, %v1177_v0  ;;  %v371_v15 = vsel %vm339_vm1, %v366_v12, %v1177_v0  ;;  %s986_s21 = sshll.u32 %s303_s20, 3  ;;  %s988_s8 = sshll.u32 %s1380_s24, 2  ;;  %vm863_vm9 = vcmask 195584  }
  0x15   : > { %435 = vmatpush.msra.mxu0 %v340_v13  ;;  %1037 = vmatpush.msra.mxu2 %v340_v13  ;;  %s1242_s30 = scalar_lea.vmem %s1362_s0, %s986_s21  ;;  %s319_s9 = sadd.s32 %s988_s8, %s987_s7  ;;  %vm865_vm10 = vcmask 228352   ;;  %vm867_vm11 = vcmask 257024  }
  0x16   : > { %v380_v16 = vld [vmem:[%s1242_s30] sm:$0xff]  ;;  %v381_v17 = vld [vmem:[%s1242_s30 + $0x8] sm:$0x1]  ;;  %v1002_v27 = vld [vmem:[%s1242_s30 + $0x10] sm:$0xff]  ;;  %s989_s10 = sshll.u32 %s319_s9, 3  ;;  %s1132_s16 = smov 8  }
  0x17   : > { %542 = vmatpush.msrb.mxu2 %v355_v14  ;;  %652 = vmatpush.msrb.mxu0 %v371_v15  ;;  %v1247_v18 = vld [vmem:[%s1242_s30 + $0x60] sm:$0xff]  ;;  %v397_v19 = vrot.slane %v380_v16, 1  ;;  %v398_v20 = vrot.slane %v381_v17, 1  ;;  %v387_v21 = vld [vmem:[%s1242_s30 + $0x68] sm:$0x1]  ;;  %v503_v32 = vrot.slane %v1002_v27, 1  ;;  %s321_s13 = scalar_lea.vmem %s1363_s1, %s989_s10 }
  0x18   : > { %v406_v22 = vrot.slane %v1247_v18, 1  ;;  %998 = vmatmul.msk.f32.vlgmr.msra.gmra.mxu1 %vm411_vm2, %v380_v16  ;;  %1001 = vmatmul.msk.f32.vlgmr.msra.gmra.mxu3 %vm411_vm2, %v1247_v18  ;;  %v407_v23 = vrot.slane %v387_v21, 1  ;;  %v382_v24 = vld [vmem:[%s1242_s30 + $0x20] sm:$0xff]  ;;  %v383_v25 = vld [vmem:[%s1242_s30 + $0x28] sm:$0x1]  ;;  %v1004_v38 = vld [vmem:[%s1242_s30 + $0x30] sm:$0xff] }
  0x19   : > { %751 = vmatpush.msra.mxu3 %v1025_v6  ;;  %v399_v26 = vsel %vm396_vm3, %v397_v19, %v398_v20  ;;  %v1003_v28 = vld [vmem:[%s1242_s30 + $0x18] sm:$0x1]  ;;  %v400_v30 = vrot.slane %v382_v24, 1  ;;  %v401_v31 = vrot.slane %v383_v25, 1  ;;  %v384_v36 = vld [vmem:[%s1242_s30 + $0x40] sm:$0xff]  ;;  %v506_v42 = vrot.slane %v1004_v38, 1 }
  0x1a   : > { %994 = vmatmul.msk.f32.vlgmr.msra.gmra.mxu0 %vm411_vm2, %v399_v26  ;;  %v408_v29 = vsel %vm396_vm3, %v406_v22, %v407_v23  ;;  %v504_v33 = vrot.slane %v1003_v28, 1  ;;  %v385_v37 = vld [vmem:[%s1242_s30 + $0x48] sm:$0x1]  ;;  %v1005_v39 = vld [vmem:[%s1242_s30 + $0x38] sm:$0x1]  ;;  %v403_v40 = vrot.slane %v384_v36, 1 }
  0x1b   : > { %997 = vmatmul.msk.f32.vlgmr.msra.gmra.mxu2 %vm411_vm2, %v408_v29  ;;  %v402_v34 = vsel %vm396_vm3, %v400_v30, %v401_v31  ;;  %v404_v41 = vrot.slane %v385_v37, 1  ;;  %v507_v43 = vrot.slane %v1005_v39, 1  ;;  %v1020_v46 = vld [vmem:[%s1242_s30 + $0x28] sm:$0x1]  ;;  %v1006_v47 = vld [vmem:[%s1242_s30 + $0x50] sm:$0xff]  ;;  %v703_v63 = vld [vmem:[%s321_s13] sm:$0xff] }
  0x1c   : > { %729 = vmatpush.msra.mxu2 %v371_v15  ;;  %v505_v35 = vsel %vm396_vm3, %v503_v32, %v504_v33  ;;  %v1007_v48 = vld [vmem:[%s1242_s30 + $0x58] sm:$0x1]  ;;  %v619_v49 = vrot.slane %v1020_v46, 1  ;;  %v509_v50 = vrot.slane %v1006_v47, 1  ;;  %v1022_v54 = vld [vmem:[%s1242_s30 + $0x48] sm:$0x1] }
  0x1d   : > { %v405_v44 = vsel %vm396_vm3, %v403_v40, %v404_v41  ;;  %v508_v45 = vsel %vm396_vm3, %v506_v42, %v507_v43  ;;  %v510_v51 = vrot.slane %v1007_v48, 1  ;;  %v1008_v55 = vld [vmem:[%s1242_s30 + $0x70] sm:$0xff]  ;;  %v1009_v56 = vld [vmem:[%s1242_s30 + $0x78] sm:$0x1]  ;;  %v622_v57 = vrot.slane %v1022_v54, 1  ;;  %s1133_s17 = smov 20  }
  0x1e   : > { %v620_v52 = vsel %vm396_vm3, %v400_v30, %v619_v49  ;;  %v512_v58 = vrot.slane %v1008_v55, 1  ;;  %v513_v59 = vrot.slane %v1009_v56, 1  ;;  %v1024_v62 = vld [vmem:[%s1242_s30 + $0x68] sm:$0x1]  ;;  %v709_v3 = vrot.slane %v703_v63, 1  ;;  %s1134_s18 = smov 12  }
  0x1f   : > { %v511_v53 = vsel %vm396_vm3, %v509_v50, %v510_v51  ;;  %v623_v60 = vsel %vm396_vm3, %v403_v40, %v622_v57  ;;  %v704_v1 = vld [vmem:[%s321_s13 + $0x8] sm:$0x1]  ;;  %v625_v2 = vrot.slane %v1024_v62, 1  ;;  %v1089_v56 = vld [vmem:[#allocation9] ss:$0 sm:$0xff]  ;;  %s1135_s19 = smov 4  }
  0x20   : > { %999 = vmatmul.msk.f32.gmra.mxu1 %vm411_vm2, %v382_v24  ;;  %1015 = vmatmul.msk.f32.vlgmr.msrb.gmra.mxu3 %vm411_vm2, %v1002_v27  ;;  %v514_v61 = vsel %vm396_vm3, %v512_v58, %v513_v59  ;;  %v710_v4 = vrot.slane %v704_v1, 1  ;;  %v1130_v62 = vmov 1983009808   ;;  %s1136_s20 = smov 24   ;;  %s1137_s21 = smov 16  }
  0x21   : > { %v626_v5 = vsel %vm396_vm3, %v406_v22, %v625_v2  ;;  %s1138_s22 = smov 28   ;;  %s990_s29 = sshll.u32 %s1380_s24, 1 }
  0x22   : > { %995 = vmatmul.msk.f32.gmra.mxu0 %vm411_vm2, %v402_v34  ;;  %v711_v6 = vsel %vm396_vm3, %v709_v3, %v710_v4  ;;  %s327_s30 = sadd.s32 %s990_s29, %s1384_s23 }
  0x23   : > { %1011 = vmatmul.msk.f32.vlgmr.msrb.gmra.mxu2 %vm411_vm2, %v505_v35  ;;  %s991_s7 = sshll.u32 %s327_s30, 2 }
  0x24   : > { %s329_s24 = scalar_lea.vmem %s1368_s6, %s991_s7 }
  0x28   : > { %1000 = vmatmul.msk.f32.gmra.mxu1 %vm411_vm2, %v384_v36  ;;  %1016 = vmatmul.msk.f32.gmra.mxu3 %vm411_vm2, %v1004_v38 }
  0x2a   : > { %996 = vmatmul.msk.f32.gmra.mxu0 %vm411_vm2, %v405_v44 }
  0x2b   : > { %1012 = vmatmul.msk.f32.gmra.mxu2 %vm411_vm2, %v508_v45 }
  0x30   : > { %1017 = vmatmul.msk.f32.gmra.mxu3 %vm411_vm2, %v1006_v47  ;;  %1029 = vmatmul.msk.f32.vlgmr.msrb.gmra.mxu1 %vm411_vm2, %v382_v24 }
  0x32   : > { %1026 = vmatmul.msk.f32.vlgmr.msrb.gmra.mxu0 %vm411_vm2, %v620_v52 }
  0x33   : > { %1013 = vmatmul.msk.f32.gmra.mxu2 %vm411_vm2, %v511_v53 }
  0x38   : > { %1018 = vmatmul.msk.f32.gmra.mxu3 %vm411_vm2, %v1008_v55  ;;  %1030 = vmatmul.msk.f32.gmra.mxu1 %vm411_vm2, %v384_v36 }
  0x3a   : > { %1027 = vmatmul.msk.f32.gmra.mxu0 %vm411_vm2, %v623_v60 }
  0x3b   : > { %1014 = vmatmul.msk.f32.gmra.mxu2 %vm411_vm2, %v514_v61 }
  0x40   : > { %1031 = vmatmul.msk.f32.gmra.mxu1 %vm411_vm2, %v1247_v18  ;;  %1034 = vmatmul.msk.f32.vlgmr.msra.gmra.mxu3 %vm411_vm2, %v703_v63  ;;  %v776_v63 = vunpack.c.l.s4 %v1130_v62 }
  0x42   : > { %1028 = vmatmul.msk.f32.gmra.mxu0 %vm411_vm2, %v626_v5  ;;  %v777_v5 = vunpack.c.0.s8 %v776_v63 }
  0x43   : > { %1033 = vmatmul.msk.f32.vlgmr.msra.gmra.mxu2 %vm411_vm2, %v711_v6 }
  0x95   : > { %v474_v8 = vpop.f32.mrf.mxu1 }
  0x97   : > { %v437_v9 = vpop.f32.mrf.mxu0 }
  0x98   : > { %v475_v17 = vadd.f32 %v474_v8, %v437_v9 }
  0x9b   : > { %v483_v10 = vpop.f32.mrf.mxu3 }
  0x9d   : > { %v477_v11 = vpop.f32.mrf.mxu1 }
  0x9e   : > { %v446_v12 = vpop.f32.mrf.mxu2 }
  0x9f   : > { %v440_v13 = vpop.f32.mrf.mxu0  ;;  %v484_v44 = vadd.f32 %v483_v10, %v446_v12 }
  0xa0   : > { %v478_v24 = vadd.f32 %v477_v11, %v440_v13  ;;  %v1131_v11 = vmov 1934713408  }
  0xa1   : > { %v800_v12 = vunpack.c.l.s4 %v1131_v11 }
  0xa3   : > { %v581_v14 = vpop.f32.mrf.mxu3 }
  0xa5   : > { %v480_v15 = vpop.f32.mrf.mxu1 }
  0xa6   : > { %v544_v16 = vpop.f32.mrf.mxu2 }
  0xa7   : > { %v582_v18 = vadd.f32 %v581_v14, %v544_v16  ;;  %v443_v19 = vpop.f32.mrf.mxu0 }
  0xa8   : > { %v481_v34 = vadd.f32 %v480_v15, %v443_v19 }
  0xa9   : > { %v593_v20 = vadd.f32 %v582_v18, %v475_v17 }
  0xab   : > { %v584_v21 = vpop.f32.mrf.mxu3  ;;  %598 = vst.msk [vmem:[#allocation2] sm:$0xff] %vm597_vm4, %v593_v20 }
  0xad   : > { %v686_v22 = vpop.f32.mrf.mxu1 }
  0xae   : > { %v547_v23 = vpop.f32.mrf.mxu2 }
  0xaf   : > { %v585_v25 = vadd.f32 %v584_v21, %v547_v23  ;;  %v654_v26 = vpop.f32.mrf.mxu0  ;;  %v801_v21 = vunpack.c.0.s8 %v800_v12 }
  0xb0   : > { %v687_v27 = vadd.f32 %v686_v22, %v654_v26 }
  0xb1   : > { %v594_v28 = vadd.f32 %v585_v25, %v478_v24 }
  0xb2   : > { %v602_v29 = vld [vmem:[#allocation2] sm:$0xff] }
  0xb3   : > { %v587_v30 = vpop.f32.mrf.mxu3  ;;  %599 = vst.msk [vmem:[#allocation2 + $0x8] sm:$0xff] %vm597_vm4, %v594_v28  ;;  %v695_v31 = vadd.f32 %v687_v27, %v602_v29 }
  0xb5   : > { %v689_v32 = vpop.f32.mrf.mxu1  ;;  %698 = vst.msk [vmem:[#allocation2] sm:$0xff] %vm597_vm4, %v695_v31 }
  0xb6   : > { %v550_v33 = vpop.f32.mrf.mxu2 }
  0xb7   : > { %v588_v35 = vadd.f32 %v587_v30, %v550_v33  ;;  %v657_v36 = vpop.f32.mrf.mxu0 }
  0xb8   : > { %v690_v37 = vadd.f32 %v689_v32, %v657_v36 }
  0xb9   : > { %v595_v38 = vadd.f32 %v588_v35, %v481_v34 }
  0xba   : > { %v603_v39 = vld [vmem:[#allocation2 + $0x8] sm:$0xff] }
  0xbb   : > { %600 = vst.msk [vmem:[#allocation2 + $0x10] sm:$0xff] %vm597_vm4, %v595_v38  ;;  %v696_v40 = vadd.f32 %v690_v37, %v603_v39  ;;  %v590_v41 = vpop.f32.mrf.mxu3 }
  0xbc   : > { %v758_v59 = vld [vmem:[#allocation2] sm:$0xff] }
  0xbd   : > { %699 = vst.msk [vmem:[#allocation2 + $0x8] sm:$0xff] %vm597_vm4, %v696_v40  ;;  %v692_v42 = vpop.f32.mrf.mxu1  ;;  %v766_v1 = vadd.f32 %v1089_v56, %v758_v59 }
  0xbe   : > { %v553_v43 = vpop.f32.mrf.mxu2 }
  0xbf   : > { %v591_v45 = vadd.f32 %v590_v41, %v553_v43  ;;  %v660_v46 = vpop.f32.mrf.mxu0  ;;  %v773_v8 = vrot.slane %v766_v1, 4 }
  0xc0   : > { %v693_v47 = vadd.f32 %v692_v42, %v660_v46 }
  0xc1   : > { %v596_v48 = vadd.f32 %v591_v45, %v484_v44 }
  0xc2   : > { %v604_v49 = vld [vmem:[#allocation2 + $0x10] sm:$0xff] }
  0xc3   : > { %601 = vst.msk [vmem:[#allocation2 + $0x18] sm:$0xff] %vm597_vm4, %v596_v48  ;;  %v697_v50 = vadd.f32 %v693_v47, %v604_v49  ;;  %v753_v51 = vpop.f32.mrf.mxu3 }
  0xc4   : > { %v759_v60 = vld [vmem:[#allocation2 + $0x8] sm:$0xff] }
  0xc5   : > { %700 = vst.msk [vmem:[#allocation2 + $0x10] sm:$0xff] %vm597_vm4, %v697_v50  ;;  %v767_v2 = vadd.f32 %v1089_v56, %v759_v60 }
  0xc6   : > { %v731_v52 = vpop.f32.mrf.mxu2 }
  0xc7   : > { %v754_v53 = vadd.f32 %v753_v51, %v731_v52  ;;  %v785_v7 = vrot.slane %v767_v2, 4 }
  0xca   : > { %v702_v54 = vld [vmem:[#allocation2 + $0x18] sm:$0xff] }
  0xcb   : > { %v756_v55 = vadd.f32 %v754_v53, %v702_v54 }
  0xcc   : > { %v760_v57 = vld [vmem:[#allocation2 + $0x10] sm:$0xff] }
  0xcd   : > { %757 = vst.msk [vmem:[#allocation2 + $0x18] sm:$0xff] %vm597_vm4, %v756_v55  ;;  %v768_v58 = vadd.f32 %v1089_v56, %v760_v57 }
  0xcf   : > { %v770_v61 = vrot.slane %v768_v58, 4  ;;  %v774_v13 = vsel %vm771_vm5, %v768_v58, %v773_v8 }
  0xd0   : > { %v782_v19 = vperm.slane %v774_v13, %v777_v5 }
  0xd1   : > { %v772_v3 = vsel %vm771_vm5, %v770_v61, %v766_v1 }
  0xd2   : > { %v778_v9 = vperm.slane %v772_v3, %v777_v5  ;;  %v809_v33 = vrot.slane %v782_v19, 4 }
  0xd4   : > { %v761_v4 = vld [vmem:[#allocation2 + $0x18] sm:$0xff]  ;;  %v797_v18 = vrot.slane %v778_v9, 4 }
  0xd5   : > { %v769_v6 = vadd.f32 %v1089_v56, %v761_v4 }
  0xd7   : > { %v783_v10 = vrot.slane %v769_v6, 4  ;;  %v786_v14 = vsel %vm771_vm5, %v769_v6, %v785_v7 }
  0xd8   : > { %v794_v15 = vperm.slane %v786_v14, %v777_v5 }
  0xd9   : > { %v784_v16 = vsel %vm771_vm5, %v783_v10, %v767_v2 }
  0xda   : > { %v790_v17 = vperm.slane %v784_v16, %v777_v5  ;;  %v807_v20 = vrot.slane %v794_v15, 4  ;;  %v810_v35 = vsel %vm771_vm5, %v794_v15, %v809_v33 }
  0xdb   : > { %v818_v37 = vperm.slane %v810_v35, %v801_v21 }
  0xdc   : > { %v795_v22 = vrot.slane %v790_v17, 4  ;;  %v798_v23 = vsel %vm771_vm5, %v790_v17, %v797_v18  ;;  %v808_v24 = vsel %vm771_vm5, %v807_v20, %v782_v19 }
  0xdd   : > { %v806_v25 = vperm.slane %v798_v23, %v801_v21  ;;  %v814_v26 = vperm.slane %v808_v24, %v801_v21  ;;  %v825_v38 = vrot.slane %v818_v37, 4 }
  0xde   : > { %v796_v27 = vsel %vm771_vm5, %v795_v22, %v778_v9 }
  0xdf   : > { %832 = vrot.lane.b32.xlu0 %v806_v25, %s1132_s16  ;;  %v823_v28 = vrot.slane %v814_v26, 4  ;;  %v821_v29 = vrot.slane %v806_v25, 4  ;;  %v802_v30 = vperm.slane %v796_v27, %v801_v21  ;;  %v826_v39 = vsel %vm771_vm5, 0.0, %v825_v38 }
  0xe1   : > { %v824_v31 = vsel %vm771_vm5, 0.0, %v823_v28  ;;  %v822_v32 = vsel %vm771_vm5, 0.0, %v821_v29  ;;  %v819_v34 = vrot.slane %v802_v30, 4 }
  0xe2   : > { %844 = vrot.lane.b32.xlu2 %v824_v31, %s1133_s17  ;;  %836 = vrot.lane.b32.xlu1 %v822_v32, %s1134_s18 }
  0xe3   : > { %v820_v36 = vsel %vm771_vm5, 0.0, %v819_v34 }
  0xe7   : > { %828 = vrot.lane.b32.xlu0 %v820_v36, %s1135_s19 }
  0xea   : > { %848 = vrot.lane.b32.xlu2 %v818_v37, %s1136_s20  ;;  %840 = vrot.lane.b32.xlu1 %v814_v26, %s1137_s21 }
  0xef   : > { %852 = vrot.lane.b32.xlu0 %v826_v39, %s1138_s22 }
 0x13c   : > { %v845_v42 = vpop.permute.xlu2 %844 }
 0x144   : > { %v849_v50 = vpop.permute.xlu2 %848 }
 0x151   : > { %v833_v40 = vpop.permute.xlu0 %832 }
 0x154   : > { %v837_v41 = vpop.permute.xlu1 %836 }
 0x159   : > { %v829_v43 = vpop.permute.xlu0 %828 }
 0x15a   : > { %v855_v44 = vsel %vm597_vm4, %v802_v30, %v829_v43 }
 0x15b   : > { %v856_v45 = vsel %vm411_vm2, %v855_v44, %v833_v40 }
 0x15c   : > { %v841_v46 = vpop.permute.xlu1 %840  ;;  %v858_v47 = vsel %vm857_vm6, %v856_v45, %v837_v41 }
 0x15d   : > { %v860_v48 = vsel %vm859_vm7, %v858_v47, %v841_v46 }
 0x15e   : > { %v862_v49 = vsel %vm861_vm8, %v860_v48, %v845_v42 }
 0x15f   : > { %v864_v51 = vsel %vm863_vm9, %v862_v49, %v849_v50 }
 0x161   : > { %v853_v52 = vpop.permute.xlu0 %852 }
 0x162   : > { %v866_v53 = vsel %vm865_vm10, %v864_v51, %v853_v52 }
 0x163   : > { %868 = vst.msk [vmem:[%s329_s24] sm:$0xf] %vm867_vm11, %v866_v53 }
 0x164 PF: > { %s17_s27 = sadd.s32 1, %s1128_s27   ;;  %s1369_s23 = smov %s1120_s25 }
 0x165   : > { %p14_p8 = scmp.ge.s32.totalorder %s17_s27, 6   ;;  %s1370_s24 = smov %s1124_s26 }
 0x166   : > { %s1371_s25 = smov %s1374_s4  ;;  %s1372_s26 = smov %s1378_s28 }
 0x167   :  { %16 = sbr.rel (!%p14_p8) target bundleno = 3 (0x3), region = 84 }

</bundles_post_ra>
